<compile_context>
chip_gen: v7x
topology: tpu7x:2x2x1
jax: 0.10.0
libtpu: 0.0.40
codegen_flags: <defaults>
</compile_context>

<pallas_src>
import jax
import jax.numpy as jnp
from jax.experimental import pallas as pl
from jax.experimental.pallas import tpu as pltpu


def _linear_kernel(x_ref, wt_ref, b_ref, o_ref):
    # x_ref : (TN, K)  row-block of the input (K == 4, full last dim)
    # wt_ref: (K,  M)  W^T, resident across all grid steps
    # b_ref : (1,  M)  bias row, resident
    # o_ref : (TN, M)  output row-block (M == 3, full last dim)
    x = x_ref[...]
    wt = wt_ref[...]
    k = wt.shape[0]  # static (4)

    # Unrolled VPU broadcast-MAC: acc[r, m] = sum_k x[r, k] * wt[k, m]
    acc = x[:, 0:1] * wt[0:1, :]
    for kk in range(1, k):
        acc = acc + x[:, kk:kk + 1] * wt[kk:kk + 1, :]

    o_ref[...] = (acc + b_ref[...]).astype(o_ref.dtype)


def linear_pallas(x, weight, bias, *, block_n=1024):
    """y = x @ weight.T + bias, matching torch.nn.Linear(4, 3) semantics."""
    n, k = x.shape
    m = weight.shape[0]
    assert weight.shape == (m, k)
    assert bias.shape == (m,)

    x = x.astype(jnp.float32)
    wt = weight.T.astype(jnp.float32)            # (K, M), tiny, VMEM-resident
    b2 = bias.astype(jnp.float32).reshape(1, m)  # (1, M)

    # Row-tile size: multiple of 8 (sublane), capped so per-block VMEM stays
    # small (few hundred KiB double-buffered) on v5e/v6e/v7x alike.
    tn = min(block_n, ((n + 7) // 8) * 8)
    n_pad = pl.cdiv(n, tn) * tn
    if n_pad != n:
        x = jnp.pad(x, ((0, n_pad - n), (0, 0)))

    out = pl.pallas_call(
        _linear_kernel,
        out_shape=jax.ShapeDtypeStruct((n_pad, m), jnp.float32),
        grid=(n_pad // tn,),
        in_specs=[
            pl.BlockSpec((tn, k), lambda i: (i, 0)),   # stream input rows
            pl.BlockSpec((k, m), lambda i: (0, 0)),    # W^T stays resident
            pl.BlockSpec((1, m), lambda i: (0, 0)),    # bias stays resident
        ],
        out_specs=pl.BlockSpec((tn, m), lambda i: (i, 0)),
        compiler_params=pltpu.CompilerParams(
            dimension_semantics=("parallel",),
        ),
    )(x, wt, b2)

    return out[:n] if n_pad != n else out


def init_params(key, in_features=4, out_features=3):
    # Deterministic init mirroring torch.nn.Linear default (uniform ±1/sqrt(fan_in)).
    kw, kb = jax.random.split(key)
    bound = 1.0 / (in_features ** 0.5)
    weight = jax.random.uniform(
        kw, (out_features, in_features), jnp.float32, -bound, bound
    )
    bias = jax.random.uniform(kb, (out_features,), jnp.float32, -bound, bound)
    return weight, bias


if __name__ == "__main__":
    key = jax.random.PRNGKey(0)
    k_x, k_x2, k_p = jax.random.split(key, 3)

    weight, bias = init_params(k_p)

    # Small batch: (8, 4) -> (8, 3), single grid step.
    x_small = jax.random.normal(k_x, (8, 4), dtype=jnp.float32)
    y_small = linear_pallas(x_small, weight, bias)
    jax.block_until_ready(y_small)
    ref_small = x_small @ weight.T + bias
    assert y_small.shape == (8, 3)
    assert jnp.allclose(y_small, ref_small, atol=1e-5, rtol=1e-5)

    # Larger, non-multiple-of-tile batch to exercise the N-grid + edge padding.
    x_big = jax.random.normal(k_x2, (2000, 4), dtype=jnp.float32)
    y_big = linear_pallas(x_big, weight, bias)
    jax.block_until_ready(y_big)
    ref_big = x_big @ weight.T + bias
    assert y_big.shape == (2000, 3)
    assert jnp.allclose(y_big, ref_big, atol=1e-5, rtol=1e-5)

    print("KERNEL_OK")
</pallas_src>

<mosaic_0001>
module attributes {stable_mosaic.version = 11 : i64} {
  func.func @_linear_kernel(%arg0: i32, %arg1: memref<8x4xf32, #tpu.memory_space<vmem>>, %arg2: memref<4x3xf32, #tpu.memory_space<vmem>>, %arg3: memref<1x3xf32, #tpu.memory_space<vmem>>, %arg4: memref<8x3xf32, #tpu.memory_space<vmem>>) attributes {dimension_semantics = [#tpu.dimension_semantics<parallel>], iteration_bounds = array<i64: 1>, scalar_prefetch = 0 : i64, scratch_operands = 0 : i64, tpu.core_type = #tpu.core_type<tc>, window_params = [{transform_indices = @transform_0, window_bounds = array<i64: 8, 4>}, {pipeline_mode = #tpu.pipeline_mode<synchronous>, transform_indices = @transform_1, window_bounds = array<i64: 4, 3>}, {pipeline_mode = #tpu.pipeline_mode<synchronous>, transform_indices = @transform_2, window_bounds = array<i64: 1, 3>}, {transform_indices = @transform_3, window_bounds = array<i64: 8, 3>}]} {
    %c0 = arith.constant 0 : index
    %c0_0 = arith.constant 0 : index
    %0 = vector.load %arg1[%c0, %c0_0] : memref<8x4xf32, #tpu.memory_space<vmem>>, vector<8x4xf32>
    %c0_1 = arith.constant 0 : index
    %c0_2 = arith.constant 0 : index
    %1 = vector.load %arg2[%c0_1, %c0_2] : memref<4x3xf32, #tpu.memory_space<vmem>>, vector<4x3xf32>
    %2 = vector.extract_strided_slice %0 {offsets = [0, 0], sizes = [8, 1], strides = [1, 1]} : vector<8x4xf32> to vector<8x1xf32>
    %3 = vector.extract_strided_slice %1 {offsets = [0, 0], sizes = [1, 3], strides = [1, 1]} : vector<4x3xf32> to vector<1x3xf32>
    %4 = vector.broadcast %2 : vector<8x1xf32> to vector<8x3xf32>
    %5 = vector.broadcast %3 : vector<1x3xf32> to vector<8x3xf32>
    %6 = arith.mulf %4, %5 : vector<8x3xf32>
    %7 = vector.extract_strided_slice %0 {offsets = [0, 1], sizes = [8, 1], strides = [1, 1]} : vector<8x4xf32> to vector<8x1xf32>
    %8 = vector.extract_strided_slice %1 {offsets = [1, 0], sizes = [1, 3], strides = [1, 1]} : vector<4x3xf32> to vector<1x3xf32>
    %9 = vector.broadcast %7 : vector<8x1xf32> to vector<8x3xf32>
    %10 = vector.broadcast %8 : vector<1x3xf32> to vector<8x3xf32>
    %11 = arith.mulf %9, %10 : vector<8x3xf32>
    %12 = arith.addf %6, %11 : vector<8x3xf32>
    %13 = vector.extract_strided_slice %0 {offsets = [0, 2], sizes = [8, 1], strides = [1, 1]} : vector<8x4xf32> to vector<8x1xf32>
    %14 = vector.extract_strided_slice %1 {offsets = [2, 0], sizes = [1, 3], strides = [1, 1]} : vector<4x3xf32> to vector<1x3xf32>
    %15 = vector.broadcast %13 : vector<8x1xf32> to vector<8x3xf32>
    %16 = vector.broadcast %14 : vector<1x3xf32> to vector<8x3xf32>
    %17 = arith.mulf %15, %16 : vector<8x3xf32>
    %18 = arith.addf %12, %17 : vector<8x3xf32>
    %19 = vector.extract_strided_slice %0 {offsets = [0, 3], sizes = [8, 1], strides = [1, 1]} : vector<8x4xf32> to vector<8x1xf32>
    %20 = vector.extract_strided_slice %1 {offsets = [3, 0], sizes = [1, 3], strides = [1, 1]} : vector<4x3xf32> to vector<1x3xf32>
    %21 = vector.broadcast %19 : vector<8x1xf32> to vector<8x3xf32>
    %22 = vector.broadcast %20 : vector<1x3xf32> to vector<8x3xf32>
    %23 = arith.mulf %21, %22 : vector<8x3xf32>
    %24 = arith.addf %18, %23 : vector<8x3xf32>
    %c0_3 = arith.constant 0 : index
    %c0_4 = arith.constant 0 : index
    %25 = vector.load %arg3[%c0_3, %c0_4] : memref<1x3xf32, #tpu.memory_space<vmem>>, vector<1x3xf32>
    %26 = vector.broadcast %25 : vector<1x3xf32> to vector<8x3xf32>
    %27 = arith.addf %24, %26 : vector<8x3xf32>
    %c0_5 = arith.constant 0 : index
    %c0_6 = arith.constant 0 : index
    %28 = vector.load %arg4[%c0_5, %c0_6] : memref<8x3xf32, #tpu.memory_space<vmem>>, vector<8x3xf32>
    tpu.vector_store %arg4[%c0_5, %c0_6], %27 {strides = array<i32>} : memref<8x3xf32, #tpu.memory_space<vmem>>, vector<8x3xf32>,
    return
  }
  func.func @transform_0(%arg0: i32) -> (i32, i32) {
    %c0_i32 = arith.constant 0 : i32
    %c0_i32_0 = arith.constant 0 : i32
    return %arg0, %c0_i32 : i32, i32
  }
  func.func @transform_1(%arg0: i32) -> (i32, i32) {
    %c0_i32 = arith.constant 0 : i32
    %c0_i32_0 = arith.constant 0 : i32
    %c0_i32_1 = arith.constant 0 : i32
    return %c0_i32, %c0_i32_0 : i32, i32
  }
  func.func @transform_2(%arg0: i32) -> (i32, i32) {
    %c0_i32 = arith.constant 0 : i32
    %c0_i32_0 = arith.constant 0 : i32
    %c0_i32_1 = arith.constant 0 : i32
    return %c0_i32, %c0_i32_0 : i32, i32
  }
  func.func @transform_3(%arg0: i32) -> (i32, i32) {
    %c0_i32 = arith.constant 0 : i32
    %c0_i32_0 = arith.constant 0 : i32
    return %arg0, %c0_i32 : i32, i32
  }
}

</mosaic_0001>

<bundles_post_ra>
// kernel: tpu_custom_call.1
= control target key start
LH: loop header
LB: loop body
LE: loop exit
PB: predicated region body
PF: predicated region fallthrough
CT: control target
= control target key end

     0   :  { %v80_v0 = vmov 0   ;;  %v81_v2 = vmov 2   ;;  %v82_v3 = vmov 1   ;;  %v83_v4 = vmov 3   ;;  %s116_s0 = inlined_call_operand.vmem [shape: f32[8,4], index: 0, kind: input, shape index: {}]   ;;  %s117_s1 = inlined_call_operand.vmem [shape: f32[4,3], index: 1, kind: input, shape index: {}]   ;;  %s118_s2 = inlined_call_operand.vmem [shape: f32[1,3], index: 2, kind: input, shape index: {}]   ;;  %s119_s3 = inlined_call_operand.vmem [shape: f32[8,3], index: 3, kind: output, shape index: {}]  }
   0x1   :  { %75 = vset.pattern.permute.xlu0 %v80_v0  ;;  %v14_v1 = vld [vmem:[%s116_s0] sm:$0xff]  ;;  %77 = vset.pattern.permute.xlu1 %v81_v2  ;;  %v21_v5 = vlaneseq  ;;  %vm64_vm0 = vcmask 23552  }
   0x2   :  { %18 = vperm.xlu0 %75, %v14_v1   ;;  %37 = vperm.xlu1 %77, %v14_v1   ;;  %v15_v9 = vld [vmem:[%s117_s1] sm:$0xf] }
   0x3   :  { %v22_v6 = vshrl.u32 %v21_v5, 7  ;;  %v70_v26 = vld [vmem:[%s118_s2] ss:$0 sm:$0xff] }
   0x5   :  { %v23_v7 = vsub.s32 0, %v22_v6  ;;  %v32_v8 = vsub.s32 1, %v22_v6  ;;  %v42_v11 = vsub.s32 2, %v22_v6  ;;  %v52_v13 = vsub.s32 3, %v22_v6 }
   0x6   :  { %76 = vset.pattern.permute.xlu0 %v82_v3  ;;  %78 = vset.pattern.permute.xlu1 %v83_v4 }
   0x7   :  { %27 = vperm.xlu0 %76, %v14_v1   ;;  %47 = vperm.xlu1 %78, %v14_v1   ;;  %v24_v14 = vrot.slane %v15_v9, %v23_v7  ;;  %v33_v15 = vrot.slane %v15_v9, %v32_v8  ;;  %v43_v16 = vrot.slane %v15_v9, %v42_v11 }
   0x8   :  { %v53_v17 = vrot.slane %v15_v9, %v52_v13 }
   0xb   :  { %79 = vset.pattern.permute.xlu0 %v83_v4 }
  0x81   :  { %v19_v10 = vpop.permute.xlu0 %18  ;;  %v38_v12 = vpop.permute.xlu1 %37 }
  0x82   :  { %v25_v20 = vmul.f32 %v24_v14, %v19_v10  ;;  %v44_v22 = vmul.f32 %v43_v16, %v38_v12 }
  0x86   :  { %v28_v18 = vpop.permute.xlu0 %27  ;;  %v48_v19 = vpop.permute.xlu1 %47 }
  0x87   :  { %v34_v21 = vmul.f32 %v33_v15, %v28_v18  ;;  %v54_v24 = vmul.f32 %v53_v17, %v48_v19 }
  0x89   :  { %v35_v23 = vadd.f32 %v34_v21, %v25_v20 }
  0x8b   :  { %v45_v25 = vadd.f32 %v44_v22, %v35_v23 }
  0x8d   :  { %v55_v27 = vadd.f32 %v54_v24, %v45_v25 }
  0x8f   :  { %v63_v28 = vadd.f32 %v70_v26, %v55_v27 }
  0x91   :  { %65 = vst.msk [vmem:[%s119_s3] sm:$0xff] %vm64_vm0, %v63_v28 }

</bundles_post_ra>
